<compile_context>
chip_gen: v5e
topology: v5e:2x2
jax: 0.10.0
libtpu: 0.0.40
codegen_flags: <defaults>
</compile_context>

<pallas_src>
import functools

import jax
import jax.numpy as jnp
from jax.experimental import pallas as pl
from jax.experimental.pallas import tpu as pltpu


def _masked_ce_kernel(x_ref, t_ref, m_ref, loss_ref, mask_ref, *,
                      hw, tile, n_hw_tiles, tiles_per_group, guard_tail):
    # x_ref: (1, C, TILE) logits (native dtype); t_ref/m_ref: (1, 1, TILE) narrow ints
    # loss_ref/mask_ref: (1, 1, 1, TILE) f32 lane-wise partials, resident across the
    # last (reduction) grid axis for a given (n, group).
    g = pl.program_id(1)
    k = pl.program_id(2)
    gk = g * tiles_per_group + k          # global hw-tile index of this step

    @pl.when(k == 0)
    def _init():
        loss_ref[...] = jnp.zeros_like(loss_ref)
        mask_ref[...] = jnp.zeros_like(mask_ref)

    x = x_ref[0].astype(jnp.float32)      # (C, TILE) classes on sublanes, pixels on lanes
    t = t_ref[0].astype(jnp.int32)        # (1, TILE) widened in-registers only
    m = m_ref[0].astype(jnp.int32)        # (1, TILE)
    mf = m.astype(jnp.float32)

    ragged = (hw % tile) != 0             # static: only emitted when a partial tail exists
    if ragged:
        col = gk * tile + jax.lax.broadcasted_iota(jnp.int32, mf.shape, 1)
        valid = col < hw
        mf = jnp.where(valid, mf, 0.0)

    masked_t = t * m                      # target * mask, exactly as in the PyTorch module

    # Stable log-sum-exp over the class (sublane) axis, per pixel (lane).
    mx = jnp.max(x, axis=0, keepdims=True)                          # (1, TILE)
    # NOTE: on v6e/v7x exp could run in bf16 (EUP bf16) for ~2x transcendental rate.
    lse = jnp.log(jnp.sum(jnp.exp(x - mx), axis=0, keepdims=True))  # (1, TILE)

    # Gather of the (masked) target logit without materializing log_softmax or a
    # separate one-hot tensor (single select+reduce pass on the VPU/XLU).
    cls = jax.lax.broadcasted_iota(jnp.int32, x.shape, 0)           # (C, TILE)
    x_t = jnp.sum(jnp.where(cls == masked_t, x, 0.0),
                  axis=0, keepdims=True)                            # (1, TILE)

    nll = mx + lse - x_t                                            # (1, TILE)
    masked_nll = nll * mf
    if ragged:
        masked_nll = jnp.where(valid, masked_nll, 0.0)              # kill NaN from garbage lanes

    def _acc():
        loss_ref[...] += masked_nll[None, None]   # (1, 1, 1, TILE)
        mask_ref[...] += mf[None, None]

    if guard_tail:
        # Padded steps (gk >= n_hw_tiles) re-read a clamped block; never accumulate it.
        pl.when(gk < n_hw_tiles)(_acc)
    else:
        _acc()


def _target_block_bytes():
    # Per-generation logits-block budget (f32-equivalent bytes).
    try:
        kind = jax.devices()[0].device_kind.lower()
    except Exception:  # pragma: no cover - defensive
        kind = ""
    if "v5" in kind:
        return 2 * 1024 * 1024   # v5e: ~0.8 TB/s HBM, 2 MiB already amortizes step overhead
    if "v7" in kind:
        return 6 * 1024 * 1024   # v7x: 3.2 TB/s HBM needs bigger blocks; VMEM is 64 MiB
    return 4 * 1024 * 1024       # v6e / unknown


def _pick_tile_hw(hw, c, itemsize, target_bytes):
    """Pick the lane-tile for the spatial axis (ragged-tail aware)."""
    eff = max(4, itemsize)       # size by the in-kernel f32 footprint, not the HBM dtype
    if c * hw * eff <= target_bytes:
        return hw                # full-extent lane block: always legal, no ragged path
    tile_max = max(128, (target_bytes // max(1, c * eff)) // 128 * 128)
    if tile_max >= hw:
        return hw
    # Balance tiles so the last block is nearly full (dead lanes < ~128 per grid pass)
    n_tiles = pl.cdiv(hw, tile_max)
    tile = pl.cdiv(pl.cdiv(hw, n_tiles), 128) * 128
    if tile >= hw:
        return hw
    return tile


def _masked_ce_sums_impl(x, t, m, *, block_hw=None, hw_groups=None):
    # x: (N, C, HW) logits (native dtype); t/m: (N, 1, HW) narrow ints
    N, C, HW = x.shape

    if block_hw is None:
        tile = _pick_tile_hw(HW, C, x.dtype.itemsize, _target_block_bytes())
    else:
        tile = HW if block_hw >= HW else int(block_hw)
        assert tile == HW or tile % 128 == 0, "block_hw must be a multiple of 128"
    n_hw_tiles = pl.cdiv(HW, tile)

    if hw_groups is None:
        # Split HW across 2 parallel groups only when the batch axis alone can't fill
        # both v7x TensorCores; on single-TC chips (v5e/v6e) this is a no-op.
        n_groups = 2 if (n_hw_tiles >= 2 and N % 2 == 1) else 1
    else:
        n_groups = max(1, min(int(hw_groups), n_hw_tiles))
    tiles_per_group = pl.cdiv(n_hw_tiles, n_groups)
    guard_tail = (n_groups * tiles_per_group) != n_hw_tiles

    kernel = functools.partial(
        _masked_ce_kernel, hw=HW, tile=tile, n_hw_tiles=n_hw_tiles,
        tiles_per_group=tiles_per_group, guard_tail=guard_tail)

    def in_map(n, g, k):
        # Clamp so padded steps never DMA out of bounds (their results are discarded).
        return (n, 0, jnp.minimum(g * tiles_per_group + k, n_hw_tiles - 1))

    def out_map(n, g, k):
        return (n, g, 0, 0)

    loss_p, mask_p = pl.pallas_call(
        kernel,
        out_shape=(
            jax.ShapeDtypeStruct((N, n_groups, 1, tile), jnp.float32),
            jax.ShapeDtypeStruct((N, n_groups, 1, tile), jnp.float32),
        ),
        grid=(N, n_groups, tiles_per_group),
        in_specs=[
            pl.BlockSpec((1, C, tile), in_map),
            pl.BlockSpec((1, 1, tile), in_map),
            pl.BlockSpec((1, 1, tile), in_map),
        ],
        out_specs=(
            pl.BlockSpec((1, 1, 1, tile), out_map),
            pl.BlockSpec((1, 1, 1, tile), out_map),
        ),
        compiler_params=pltpu.CompilerParams(
            dimension_semantics=("parallel", "parallel", "arbitrary"),
            vmem_limit_bytes=48 * 1024 * 1024),
    )(x, t, m)

    # Final cross-lane reduce + divide happen once, outside the kernel (still jitted).
    return jnp.sum(loss_p), jnp.sum(mask_p)


@functools.partial(jax.jit, static_argnames=("block_hw", "hw_groups"))
def masked_cross_entropy_sums(input_nchw, target, mask, *, block_hw=None, hw_groups=None):
    """Returns (sum(loss_i * mask), sum(mask)) — fully traceable, no host sync.

    target/mask are passed to the kernel in their native dtypes; prefer int8/uint8
    (target when num_classes fits, mask 0/1) to minimize HBM traffic — no widening
    pass is performed here.
    """
    N, C, H, W = input_nchw.shape
    x = input_nchw.reshape(N, C, H * W)       # free view: no transpose / copy
    t = target.reshape(N, 1, H * W)           # no dtype widening (saves a full HBM pass)
    m = mask.reshape(N, 1, H * W)
    return _masked_ce_sums_impl(x, t, m, block_hw=block_hw, hw_groups=hw_groups)


@jax.jit
def masked_cross_entropy_loss_traceable(input_nchw, target, mask):
    """Traceable variant: returns 0.0 (sentinel) when sum(mask) == 0."""
    loss_sum, mask_sum = masked_cross_entropy_sums(input_nchw, target, mask)
    return jnp.where(mask_sum > 0, loss_sum / jnp.maximum(mask_sum, 1.0), 0.0)


def masked_cross_entropy_loss(input_nchw, target, mask):
    """PyTorch-exact semantics (returns the string 'Ignored' when sum(mask) == 0).

    The data-dependent branch requires one device->host sync; prefer the traceable
    variants inside jitted training steps.
    """
    loss_sum, mask_sum = masked_cross_entropy_sums(input_nchw, target, mask)
    if float(mask_sum) == 0.0:
        return "Ignored"
    return loss_sum / mask_sum


def _reference_loss(logits, target, mask):
    # Pure-JAX reference (matches the PyTorch module for sum(mask) > 0).
    N, C, H, W = logits.shape
    x_r = jnp.transpose(logits, (0, 2, 3, 1)).reshape(-1, C).astype(jnp.float32)
    t_r = (target.astype(jnp.int32) * mask.astype(jnp.int32)).reshape(-1)
    m_r = mask.reshape(-1).astype(jnp.float32)
    logp = jax.nn.log_softmax(x_r, axis=-1)
    nll = -jnp.take_along_axis(logp, t_r[:, None], axis=-1)[:, 0]
    return jnp.sum(nll * m_r) / jnp.sum(m_r)


if __name__ == "__main__":
    key = jax.random.PRNGKey(0)
    k1, k2, k3, k4, k5, k6 = jax.random.split(key, 6)

    # --- Test 1: small NCHW case, default tiling (single full-extent lane block). ---
    N, C, H, W = 2, 4, 16, 16
    logits = jax.random.normal(k1, (N, C, H, W), dtype=jnp.float32)
    target = jax.random.randint(k2, (N, H, W), 0, C, dtype=jnp.int8)   # narrow dtypes in HBM
    mask = jax.random.randint(k3, (N, H, W), 0, 2, dtype=jnp.int8)

    loss = masked_cross_entropy_loss_traceable(logits, target, mask)
    loss = jax.block_until_ready(loss)
    ref = _reference_loss(logits, target, mask)
    assert jnp.allclose(loss, ref, rtol=1e-5, atol=1e-5), (loss, ref)

    loss_exact = masked_cross_entropy_loss(logits, target, mask)
    assert not isinstance(loss_exact, str)
    assert jnp.allclose(loss_exact, ref, rtol=1e-5, atol=1e-5), (loss_exact, ref)

    # --- Test 2: exercise the multi-tile + ragged-tail + hw-group (2 parallel groups) path. ---
    N2, C2, H2, W2 = 1, 4, 24, 24            # HW=576 -> 5 tiles of 128 (ragged), 2 groups
    logits2 = jax.random.normal(k4, (N2, C2, H2, W2), dtype=jnp.float32)
    target2 = jax.random.randint(k5, (N2, H2, W2), 0, C2, dtype=jnp.int8)
    mask2 = jax.random.randint(k6, (N2, H2, W2), 0, 2, dtype=jnp.int8)

    s_l, s_m = masked_cross_entropy_sums(logits2, target2, mask2, block_hw=128, hw_groups=2)
    loss2 = jax.block_until_ready(s_l / s_m)
    ref2 = _reference_loss(logits2, target2, mask2)
    assert jnp.allclose(loss2, ref2, rtol=1e-5, atol=1e-5), (loss2, ref2)

    # --- Test 3: all-zero mask -> PyTorch-exact wrapper returns 'Ignored'. ---
    assert masked_cross_entropy_loss(logits, target, jnp.zeros_like(mask)) == "Ignored"

    print("KERNEL_OK")
</pallas_src>

<mosaic_0001>
module attributes {stable_mosaic.version = 11 : i64} {
  func.func @_masked_ce_kernel(%arg0: i32, %arg1: i32, %arg2: i32, %arg3: memref<1x4x256xf32, #tpu.memory_space<vmem>>, %arg4: memref<1x1x256xi8, #tpu.memory_space<vmem>>, %arg5: memref<1x1x256xi8, #tpu.memory_space<vmem>>, %arg6: memref<1x1x1x256xf32, #tpu.memory_space<vmem>>, %arg7: memref<1x1x1x256xf32, #tpu.memory_space<vmem>>) attributes {dimension_semantics = [#tpu.dimension_semantics<parallel>, #tpu.dimension_semantics<parallel>, #tpu.dimension_semantics<arbitrary>], iteration_bounds = array<i64: 2, 1, 1>, scalar_prefetch = 0 : i64, scratch_operands = 0 : i64, tpu.core_type = #tpu.core_type<tc>, window_params = [{transform_indices = @transform_0, window_bounds = array<i64: 1, 4, 256>}, {transform_indices = @transform_1, window_bounds = array<i64: 1, 1, 256>}, {transform_indices = @transform_2, window_bounds = array<i64: 1, 1, 256>}, {transform_indices = @transform_3, window_bounds = array<i64: 1, 1, 1, 256>}, {transform_indices = @transform_4, window_bounds = array<i64: 1, 1, 1, 256>}]} {
    %c0_i32 = arith.constant 0 : i32
    %0 = arith.cmpi eq, %arg2, %c0_i32 : i32
    %1 = arith.extui %0 : i1 to i32
    %c0_i32_0 = arith.constant 0 : i32
    %2 = arith.cmpi ne, %1, %c0_i32_0 : i32
    scf.if %2 {
      %cst_28 = arith.constant 0.000000e+00 : f32
      %39 = vector.broadcast %cst_28 : f32 to vector<1x1x1x256xf32>
      %c0_29 = arith.constant 0 : index
      %c0_30 = arith.constant 0 : index
      %c0_31 = arith.constant 0 : index
      %c0_32 = arith.constant 0 : index
      %40 = vector.load %arg6[%c0_29, %c0_30, %c0_31, %c0_32] : memref<1x1x1x256xf32, #tpu.memory_space<vmem>>, vector<1x1x1x256xf32>
      tpu.vector_store %arg6[%c0_29, %c0_30, %c0_31, %c0_32], %39 {strides = array<i32>} : memref<1x1x1x256xf32, #tpu.memory_space<vmem>>, vector<1x1x1x256xf32>,
      %cst_33 = arith.constant 0.000000e+00 : f32
      %41 = vector.broadcast %cst_33 : f32 to vector<1x1x1x256xf32>
      %c0_34 = arith.constant 0 : index
      %c0_35 = arith.constant 0 : index
      %c0_36 = arith.constant 0 : index
      %c0_37 = arith.constant 0 : index
      %42 = vector.load %arg7[%c0_34, %c0_35, %c0_36, %c0_37] : memref<1x1x1x256xf32, #tpu.memory_space<vmem>>, vector<1x1x1x256xf32>
      tpu.vector_store %arg7[%c0_34, %c0_35, %c0_36, %c0_37], %41 {strides = array<i32>} : memref<1x1x1x256xf32, #tpu.memory_space<vmem>>, vector<1x1x1x256xf32>,
    } else {
    }
    %c0 = arith.constant 0 : index
    %c0_1 = arith.constant 0 : index
    %c0_2 = arith.constant 0 : index
    %3 = vector.load %arg3[%c0, %c0_1, %c0_2] : memref<1x4x256xf32, #tpu.memory_space<vmem>>, vector<1x4x256xf32>
    %4 = vector.shape_cast %3 : vector<1x4x256xf32> to vector<4x256xf32>
    %c0_3 = arith.constant 0 : index
    %c0_4 = arith.constant 0 : index
    %c0_5 = arith.constant 0 : index
    %5 = vector.load %arg4[%c0_3, %c0_4, %c0_5] : memref<1x1x256xi8, #tpu.memory_space<vmem>>, vector<1x1x256xi8>
    %6 = vector.shape_cast %5 : vector<1x1x256xi8> to vector<1x256xi8>
    %7 = arith.extsi %6 : vector<1x256xi8> to vector<1x256xi32>
    %c0_6 = arith.constant 0 : index
    %c0_7 = arith.constant 0 : index
    %c0_8 = arith.constant 0 : index
    %8 = vector.load %arg5[%c0_6, %c0_7, %c0_8] : memref<1x1x256xi8, #tpu.memory_space<vmem>>, vector<1x1x256xi8>
    %9 = vector.shape_cast %8 : vector<1x1x256xi8> to vector<1x256xi8>
    %10 = arith.extsi %9 : vector<1x256xi8> to vector<1x256xi32>
    %11 = arith.sitofp %10 : vector<1x256xi32> to vector<1x256xf32>
    %12 = arith.muli %7, %10 : vector<1x256xi32>
    %cst = arith.constant dense<0xFF800000> : vector<256xf32>
    %13 = vector.multi_reduction <maximumf>, %4, %cst [0] : vector<4x256xf32> to vector<256xf32>
    %14 = vector.shape_cast %13 : vector<256xf32> to vector<1x256xf32>
    %15 = vector.broadcast %14 : vector<1x256xf32> to vector<4x256xf32>
    %16 = arith.subf %4, %15 : vector<4x256xf32>
    %17 = math.exp %16 : vector<4x256xf32>
    %cst_9 = arith.constant dense<0.000000e+00> : vector<256xf32>
    %18 = vector.multi_reduction <add>, %17, %cst_9 [0] : vector<4x256xf32> to vector<256xf32>
    %19 = vector.shape_cast %18 : vector<256xf32> to vector<1x256xf32>
    %20 = math.log %19 : vector<1x256xf32>
    %21 = tpu.iota {dimensions = array<i32: 0>} : vector<4x256xi32>
    %22 = vector.broadcast %12 : vector<1x256xi32> to vector<4x256xi32>
    %23 = arith.cmpi eq, %21, %22 : vector<4x256xi32>
    %cst_10 = arith.constant 0.000000e+00 : f32
    %24 = vector.broadcast %cst_10 : f32 to vector<4x256xf32>
    %25 = arith.select %23, %4, %24 : vector<4x256xi1>, vector<4x256xf32>
    %cst_11 = arith.constant dense<0.000000e+00> : vector<256xf32>
    %26 = vector.multi_reduction <add>, %25, %cst_11 [0] : vector<4x256xf32> to vector<256xf32>
    %27 = vector.shape_cast %26 : vector<256xf32> to vector<1x256xf32>
    %28 = arith.addf %14, %20 : vector<1x256xf32>
    %29 = arith.subf %28, %27 : vector<1x256xf32>
    %30 = arith.mulf %29, %11 : vector<1x256xf32>
    %c0_12 = arith.constant 0 : index
    %c0_13 = arith.constant 0 : index
    %c0_14 = arith.constant 0 : index
    %c0_15 = arith.constant 0 : index
    %31 = vector.load %arg6[%c0_12, %c0_13, %c0_14, %c0_15] : memref<1x1x1x256xf32, #tpu.memory_space<vmem>>, vector<1x1x1x256xf32>
    %32 = vector.shape_cast %30 : vector<1x256xf32> to vector<1x1x1x256xf32>
    %33 = arith.addf %31, %32 : vector<1x1x1x256xf32>
    %c0_16 = arith.constant 0 : index
    %c0_17 = arith.constant 0 : index
    %c0_18 = arith.constant 0 : index
    %c0_19 = arith.constant 0 : index
    %34 = vector.load %arg6[%c0_16, %c0_17, %c0_18, %c0_19] : memref<1x1x1x256xf32, #tpu.memory_space<vmem>>, vector<1x1x1x256xf32>
    tpu.vector_store %arg6[%c0_16, %c0_17, %c0_18, %c0_19], %33 {strides = array<i32>} : memref<1x1x1x256xf32, #tpu.memory_space<vmem>>, vector<1x1x1x256xf32>,
    %c0_20 = arith.constant 0 : index
    %c0_21 = arith.constant 0 : index
    %c0_22 = arith.constant 0 : index
    %c0_23 = arith.constant 0 : index
    %35 = vector.load %arg7[%c0_20, %c0_21, %c0_22, %c0_23] : memref<1x1x1x256xf32, #tpu.memory_space<vmem>>, vector<1x1x1x256xf32>
    %36 = vector.shape_cast %11 : vector<1x256xf32> to vector<1x1x1x256xf32>
    %37 = arith.addf %35, %36 : vector<1x1x1x256xf32>
    %c0_24 = arith.constant 0 : index
    %c0_25 = arith.constant 0 : index
    %c0_26 = arith.constant 0 : index
    %c0_27 = arith.constant 0 : index
    %38 = vector.load %arg7[%c0_24, %c0_25, %c0_26, %c0_27] : memref<1x1x1x256xf32, #tpu.memory_space<vmem>>, vector<1x1x1x256xf32>
    tpu.vector_store %arg7[%c0_24, %c0_25, %c0_26, %c0_27], %37 {strides = array<i32>} : memref<1x1x1x256xf32, #tpu.memory_space<vmem>>, vector<1x1x1x256xf32>,
    return
  }
  func.func @transform_0(%arg0: i32, %arg1: i32, %arg2: i32) -> (i32, i32, i32) {
    %c1_i32 = arith.constant 1 : i32
    %0 = arith.muli %arg1, %c1_i32 : i32
    %1 = arith.addi %0, %arg2 : i32
    %c0_i32 = arith.constant 0 : i32
    %2 = arith.minsi %1, %c0_i32 : i32
    %c0_i32_0 = arith.constant 0 : i32
    %c0_i32_1 = arith.constant 0 : i32
    return %arg0, %c0_i32_0, %2 : i32, i32, i32
  }
  func.func @transform_1(%arg0: i32, %arg1: i32, %arg2: i32) -> (i32, i32, i32) {
    %c1_i32 = arith.constant 1 : i32
    %0 = arith.muli %arg1, %c1_i32 : i32
    %1 = arith.addi %0, %arg2 : i32
    %c0_i32 = arith.constant 0 : i32
    %2 = arith.minsi %1, %c0_i32 : i32
    %c0_i32_0 = arith.constant 0 : i32
    %c0_i32_1 = arith.constant 0 : i32
    return %arg0, %c0_i32_0, %2 : i32, i32, i32
  }
  func.func @transform_2(%arg0: i32, %arg1: i32, %arg2: i32) -> (i32, i32, i32) {
    %c1_i32 = arith.constant 1 : i32
    %0 = arith.muli %arg1, %c1_i32 : i32
    %1 = arith.addi %0, %arg2 : i32
    %c0_i32 = arith.constant 0 : i32
    %2 = arith.minsi %1, %c0_i32 : i32
    %c0_i32_0 = arith.constant 0 : i32
    %c0_i32_1 = arith.constant 0 : i32
    return %arg0, %c0_i32_0, %2 : i32, i32, i32
  }
  func.func @transform_3(%arg0: i32, %arg1: i32, %arg2: i32) -> (i32, i32, i32, i32) {
    %c0_i32 = arith.constant 0 : i32
    %c0_i32_0 = arith.constant 0 : i32
    %c0_i32_1 = arith.constant 0 : i32
    return %arg0, %arg1, %c0_i32, %c0_i32_0 : i32, i32, i32, i32
  }
  func.func @transform_4(%arg0: i32, %arg1: i32, %arg2: i32) -> (i32, i32, i32, i32) {
    %c0_i32 = arith.constant 0 : i32
    %c0_i32_0 = arith.constant 0 : i32
    %c0_i32_1 = arith.constant 0 : i32
    return %arg0, %arg1, %c0_i32, %c0_i32_0 : i32, i32, i32, i32
  }
}

</mosaic_0001>

<bundles_post_ra>
// kernel: masked_cross_entropy_sums.1
= control target key start
LH: loop header
LB: loop body
LE: loop exit
PB: predicated region body
PF: predicated region fallthrough
CT: control target
= control target key end

     0   :  { %s778_s15 = smov 0   ;;  %s780_s16 = smov 0   ;;  %s854_s0 = inlined_call_operand.vmem [shape: f32[2,4,256], index: 0, kind: input, shape index: {}]   ;;  %s855_s1 = inlined_call_operand.vmem [shape: s8[2,1,256], index: 1, kind: input, shape index: {}]   ;;  %s856_s2 = inlined_call_operand.vmem [shape: s8[2,1,256], index: 2, kind: input, shape index: {}]   ;;  %s857_s3 = inlined_call_operand.vmem [shape: f32[2,1,1,256], index: 3, kind: output, shape index: {0}]   ;;  %s858_s4 = inlined_call_operand.vmem [shape: f32[2,1,1,256], index: 4, kind: output, shape index: {1}]  }
   0x1   :  { %s782_s17 = smov 0  }
   0x2 LB: > { %s34_s18 = sadd.s32 1, %s746_s16  ;;  %p687_p0 = scmp.ge.s32.totalorder %s750_s17, 1  ;;  %s750_s17 = sphi %s782_s17, %s15_s17   ;;  %s746_s16 = sphi %s780_s16, %s862_s16   ;;  %s742_s15 = sphi %s778_s15, %s861_s15  }
   0x3   : > { %p36_p1 = scmp.ge.s32.totalorder %s34_s18, 2  ;;  %p263_p2 = scmp.lt.s32.totalorder %s750_s17, 3 }
   0x5   : > { %s864_s18 = smov (%p36_p1, %s34_s18), 0  ;;  %p264_p3 = pnand %p687_p0, %p263_p2 }
   0x6   : > { %p333_p4 = scmp.lt.s32.totalorder (!%p264_p3), %s742_s15, 1 }
   0x7   : > { %267 = sbr.rel (%p264_p3) target bundleno = 94 (0x5e), region = 32 }
   0xc   : > { %s866_s15 = smov (!%p333_p4, %s742_s15), 1  ;;  %vm414_vm0 = vcmask 1043456   ;;  %v395_v25 = vlaneseq  ;;  %v752_v27 = vmov 0.0   ;;  %vm505_vm2 = vcmask 1040384  }
   0xd   : > { %s696_s19 = sshll.u32 %s866_s15, 3  ;;  %s690_s23 = sshll.u32 %s866_s15, 1 }
   0xe   : > { %s340_s22 = scalar_lea.vmem %s854_s0, %s696_s19  ;;  %s355_s26 = scalar_lea.vmem %s855_s1, %s690_s23  ;;  %vm822_vm1 = vcmp.lt.s32.totalorder %v395_v25, 256  ;;  %v462_v34 = vshrl.u32 %v395_v25, 7 }
   0xf   : > { %v401_v0 = vld [vmem:[%s340_s22] sm:$0xff]  ;;  %s370_s29 = scalar_lea.vmem %s856_s2, %s690_s23  ;;  %s817_s6 = scalar_lea.vmem %s857_s3, %s690_s23 }
  0x10   : > { %409 = vst [vmem:[#allocation1] ss:$2 sm:$0xff] %v401_v0  ;;  %v402_v21 = vld [vmem:[%s355_s26] sm:$0x3]  ;;  %s390_s9 = scalar_lea.vmem %s858_s4, %s690_s23 }
  0x11   : > { %v404_v22 = vld [vmem:[%s370_s29] sm:$0x3]  ;;  %v403_v23 = vunpack.c.0.s8 %v402_v21  ;;  %399 = vst.msk [vmem:[%s817_s6] sm:$0x3] %vm822_vm1, %v752_v27 }
  0x12   : > { %v405_v24 = vunpack.c.0.s8 %v404_v22  ;;  %400 = vst.msk [vmem:[%s390_s9] sm:$0x3] %vm822_vm1, %v752_v27 }
  0x14   : > { %v407_v28 = vmul.u32 %v405_v24, %v403_v23  ;;  %v406_v31 = vcvt.s32.f32 %v405_v24 }
  0x16   : > { %v463_v30 = vperm.slane %v407_v28, 0  ;;  %v464_v32 = vperm.slane %v407_v28, 4  ;;  %v515_v33 = vrot.slane %v406_v31, 3  ;;  %v495_v21 = vperm.slane %v406_v31, 0 }
  0x17   : > { %v410_v1 = vld.sshfl [vmem:[#allocation1] sm:$0xff pattern:$0x75316420]  ;;  %v411_v2 = vld.sshfl [vmem:[#allocation1 + $0x8] sm:$0xff pattern:$0x75316420] }
  0x18   : > { %v415_v3 = vsel %vm414_vm0, %v410_v1, -inf  ;;  %v422_v4 = vsel %vm414_vm0, %v411_v2, -inf  ;;  %v465_v35 = vperm.slane %v463_v30, 0  ;;  %v516_v38 = vsel %vm505_vm2, %v406_v31, %v515_v33  ;;  %v501_v24 = vld [vmem:[%s817_s6] sm:$0x3] }
  0x19   : > { %v416_v5 = vrot.slane %v415_v3, 4  ;;  %v423_v6 = vrot.slane %v422_v4, 4  ;;  %v514_v41 = vld [vmem:[%s390_s9] sm:$0x3]  ;;  %v466_v44 = vperm.slane %v464_v32, 0 }
  0x1a   : > { %v518_v45 = vadd.f32 %v516_v38, %v514_v41  ;;  %vm467_vm3 = vcmp.eq.s32.totalorder %v462_v34, %v465_v35 }
  0x1b   : > { %v417_v7 = vmax.f32 %v415_v3, %v416_v5  ;;  %v424_v8 = vmax.f32 %v422_v4, %v423_v6  ;;  %vm468_vm4 = vcmp.eq.s32.totalorder %v462_v34, %v466_v44 }
  0x1c   : > { %519 = vst.msk [vmem:[%s390_s9] sm:$0x3] %vm822_vm1, %v518_v45 }
  0x1d   : > { %v418_v9 = vrot.slane %v417_v7, 2  ;;  %v425_v10 = vrot.slane %v424_v8, 2 }
  0x1f   : > { %v419_v11 = vmax.f32 %v417_v7, %v418_v9  ;;  %v426_v12 = vmax.f32 %v424_v8, %v425_v10 }
  0x21   : > { %v420_v13 = vrot.slane %v419_v11, 1  ;;  %v427_v14 = vrot.slane %v426_v12, 1 }
  0x23   : > { %v801_v15 = vmax.f32 %v426_v12, %v427_v14  ;;  %v803_v16 = vmax.f32 %v419_v11, %v420_v13 }
  0x25   : > { %v431_v17 = vrot.slane %v801_v15, 4 }
  0x27   : > { %v432_v18 = vsel %vm414_vm0, %v803_v16, %v431_v17 }
  0x28   : > { %v434_v19 = vsub.f32 %v401_v0, %v432_v18  ;;  %v496_v18 = vperm.slane %v406_v31, 4 }
  0x2a   : > { %v435_v20 = vmul.f32 1.442695, %v434_v19 }
  0x2c   : > { %722 = vpow2.f32 %v435_v20 }
  0x32   : > { %v723_v29 = vpop.eup %722 }
  0x33   : > { %438 = vst [vmem:[#allocation1] ss:$2 sm:$0xff] %v723_v29 }
  0x3a   : > { %v439_v36 = vld.sshfl [vmem:[#allocation1] sm:$0xff pattern:$0x75316420]  ;;  %v440_v37 = vld.sshfl [vmem:[#allocation1 + $0x8] sm:$0xff pattern:$0x75316420] }
  0x3b   : > { %v443_v39 = vsel %vm414_vm0, %v439_v36, 0.0  ;;  %v450_v40 = vsel %vm414_vm0, %v440_v37, 0.0  ;;  %469 = vst [vmem:[#allocation1] ss:$2 sm:$0xff] %v401_v0 }
  0x3c   : > { %v444_v42 = vrot.slane %v443_v39, 4  ;;  %v451_v43 = vrot.slane %v450_v40, 4 }
  0x3e   : > { %v445_v46 = vadd.f32 %v444_v42, %v443_v39  ;;  %v452_v47 = vadd.f32 %v451_v43, %v450_v40 }
  0x40   : > { %v446_v48 = vrot.slane %v445_v46, 2  ;;  %v453_v49 = vrot.slane %v452_v47, 2 }
  0x42   : > { %v447_v50 = vadd.f32 %v446_v48, %v445_v46  ;;  %v454_v51 = vadd.f32 %v453_v49, %v452_v47  ;;  %v470_v52 = vld.sshfl [vmem:[#allocation1] sm:$0xff pattern:$0x75316420]  ;;  %v471_v53 = vld.sshfl [vmem:[#allocation1 + $0x8] sm:$0xff pattern:$0x75316420] }
  0x43   : > { %v474_v54 = vsel %vm467_vm3, %v470_v52, 0.0  ;;  %v475_v55 = vsel %vm468_vm4, %v471_v53, 0.0 }
  0x44   : > { %v448_v56 = vrot.slane %v447_v50, 1  ;;  %v455_v57 = vrot.slane %v454_v51, 1  ;;  %v476_v58 = vsel %vm414_vm0, %v474_v54, 0.0  ;;  %v483_v59 = vsel %vm414_vm0, %v475_v55, 0.0 }
  0x45   : > { %v477_v60 = vrot.slane %v476_v58, 4  ;;  %v484_v61 = vrot.slane %v483_v59, 4 }
  0x46   : > { %v449_v62 = vadd.f32 %v448_v56, %v447_v50  ;;  %v456_v63 = vadd.f32 %v455_v57, %v454_v51 }
  0x47   : > { %v478_v0 = vadd.f32 %v477_v60, %v476_v58  ;;  %v485_v1 = vadd.f32 %v484_v61, %v483_v59 }
  0x48   : > { %724 = vlog2.f32 %v449_v62 }
  0x49   : > { %726 = vlog2.f32 %v456_v63  ;;  %v479_v2 = vrot.slane %v478_v0, 2  ;;  %v486_v3 = vrot.slane %v485_v1, 2 }
  0x4b   : > { %v480_v4 = vadd.f32 %v479_v2, %v478_v0  ;;  %v487_v5 = vadd.f32 %v486_v3, %v485_v1 }
  0x4d   : > { %v481_v7 = vrot.slane %v480_v4, 1  ;;  %v488_v8 = vrot.slane %v487_v5, 1 }
  0x4e   : > { %v725_v6 = vpop.eup %724 }
  0x4f   : > { %v727_v9 = vpop.eup %726  ;;  %v458_v10 = vmul.f32 0.6931472, %v725_v6  ;;  %v482_v13 = vadd.f32 %v481_v7, %v480_v4  ;;  %v489_v14 = vadd.f32 %v488_v8, %v487_v5 }
  0x50   : > { %v460_v11 = vmul.f32 0.6931472, %v727_v9 }
  0x51   : > { %v490_v12 = vadd.f32 %v458_v10, %v803_v16 }
  0x52   : > { %v491_v17 = vadd.f32 %v460_v11, %v801_v15 }
  0x53   : > { %v492_v19 = vsub.f32 %v490_v12, %v482_v13 }
  0x54   : > { %v493_v20 = vsub.f32 %v491_v17, %v489_v14 }
  0x55   : > { %v499_v23 = vmul.f32 %v495_v21, %v492_v19 }
  0x56   : > { %v500_v22 = vmul.f32 %v496_v18, %v493_v20 }
  0x58   : > { %v504_v25 = vrot.slane %v500_v22, 7 }
  0x5a   : > { %v506_v27 = vsel %vm505_vm2, %v499_v23, %v504_v25 }
  0x5b   : > { %v508_v28 = vadd.f32 %v506_v27, %v501_v24 }
  0x5d   : > { %513 = vst.msk [vmem:[%s817_s6] sm:$0x3] %vm822_vm1, %v508_v28 }
  0x5e PF: > { %s15_s17 = sadd.s32 1, %s750_s17   ;;  %s861_s15 = smov %s746_s16 }
  0x5f   : > { %p12_p5 = scmp.ge.s32.totalorder %s15_s17, 4   ;;  %s862_s16 = smov %s864_s18 }
  0x61   :  { %14 = sbr.rel (!%p12_p5) target bundleno = 2 (0x2), region = 84 }

</bundles_post_ra>
